<compile_context>
chip_gen: v5e
topology: v5e:2x2
jax: 0.10.0
libtpu: 0.0.40
codegen_flags: <defaults>
</compile_context>

<pallas_src>
import functools

import jax
import jax.numpy as jnp
import numpy as np
from jax.experimental import pallas as pl
from jax.experimental.pallas import tpu as pltpu

NUM_BRANCHES = 4


def dmcu_dae_kernel(x_ref,            # VMEM (T, P*in)        f32
                    w1_ref, b1_ref,   # VMEM (P*in, P*B*out) bf16, (1, P*B*out) f32
                    w2_ref, b2_ref,   # VMEM (P*B*out, P*out) bf16, (1, P*out) f32
                    out_ref):         # VMEM (T, P*out)       f32
    x = x_ref[...].astype(jnp.bfloat16)

    # Folded layer1+layer2 (all branches, all packed rows) + ReLU.
    h = jnp.dot(x, w1_ref[...], preferred_element_type=jnp.float32)
    h = jnp.maximum(h + b1_ref[...], 0.0).astype(jnp.bfloat16)

    # Folded (gate_i * W3_i @ Wout_i) stage + folded bias -> final output.
    out = jnp.dot(h, w2_ref[...], preferred_element_type=jnp.float32)
    out_ref[...] = out + b2_ref[...]


def _round_up(v, m):
    return ((v + m - 1) // m) * m


@functools.partial(jax.jit, static_argnames=("max_tile_rows",))
def dmcu_dae_forward(params, x, max_tile_rows=2048):
    """DMCU_DAE forward (edge_index=None) via one pipelined pallas_call."""
    n, in_f = x.shape
    num_b, _, out_f = params["W1"].shape
    bo = num_b * out_f

    # gates = softmax(branch_gates / temperature)  -- tiny scalar glue in JAX.
    gates = jax.nn.softmax(params["branch_gates"] / params["temperature"])

    # ---- fold weights (all in f32, single bf16 cast at the end) -------------
    # Layer1+Layer2 fold: W12_i = W1_i @ W2_i, b12_i = b1_i @ W2_i + b2_i,
    # concatenated branch-major along the lane axis -> (in, B*out).
    w12 = jnp.einsum("bio,boj->bij", params["W1"], params["W2"])        # (B,in,out)
    w12_all = jnp.transpose(w12, (1, 0, 2)).reshape(in_f, bo)           # (in, B*out)
    b12_all = (jnp.einsum("bi,bij->bj", params["b1"], params["W2"])
               + params["b2"]).reshape(1, bo)                           # (1, B*out)

    # gate_i * W3_i @ Wout_i  -> (B*out, out); fold b3's contribution and the
    # output-layer bias into a single final bias.
    m_cat = jnp.einsum("b,bio,boj->bij", gates,
                       params["W3"], params["W_out"]).reshape(bo, out_f)
    b_fold = (params["b_out"] + jnp.einsum("b,bo,boj->j", gates,
                                           params["b3"], params["W_out"])
              ).reshape(1, out_f)

    # ---- row packing: P logical rows per 128-lane physical row --------------
    pack = 128 // out_f if (out_f < 128 and 128 % out_f == 0) else 1
    if n % pack:
        # <= pack-1 rows of zero padding, only when N is not a multiple of P.
        x = jnp.pad(x, ((0, pack - n % pack), (0, 0)))
    rows = x.shape[0] // pack
    x_p = x.reshape(rows, pack * in_f)            # free: row-major contiguous

    eye = jnp.eye(pack, dtype=jnp.float32)
    w1_p = jnp.kron(eye, w12_all).astype(jnp.bfloat16)    # (P*in, P*B*out)
    w2_p = jnp.kron(eye, m_cat).astype(jnp.bfloat16)      # (P*B*out, P*out)
    b1_p = jnp.tile(b12_all, (1, pack))                   # (1, P*B*out)  f32
    b2_p = jnp.tile(b_fold, (1, pack))                    # (1, P*out)    f32

    # ---- tile / grid selection ----------------------------------------------
    # Large tiles amortize the per-step overhead; keep >= 2 grid steps when
    # possible so both v7x TensorCores get work along the "parallel" axis.
    tile_rows = min(max_tile_rows, max(8, _round_up(pl.cdiv(rows, 2), 8)))
    grid = (pl.cdiv(rows, tile_rows),)            # ragged last block is masked

    const = lambda i: (0, 0)  # weights/biases resident across all grid steps

    out = pl.pallas_call(
        dmcu_dae_kernel,
        out_shape=jax.ShapeDtypeStruct((rows, pack * out_f), jnp.float32),
        grid=grid,
        in_specs=[
            pl.BlockSpec((tile_rows, pack * in_f), lambda i: (i, 0)),   # x tile
            pl.BlockSpec((pack * in_f, pack * bo), const),              # W12 (packed)
            pl.BlockSpec((1, pack * bo), const),                        # b12 (packed)
            pl.BlockSpec((pack * bo, pack * out_f), const),             # M   (packed)
            pl.BlockSpec((1, pack * out_f), const),                     # bias(packed)
        ],
        out_specs=pl.BlockSpec((tile_rows, pack * out_f), lambda i: (i, 0)),
        compiler_params=pltpu.CompilerParams(
            dimension_semantics=("parallel",),    # rows independent -> megacore
        ),
    )(x_p, w1_p, b1_p, w2_p, b2_p)

    return out.reshape(rows * pack, out_f)[:n]


def init_params(key, in_features, out_features, num_branches=NUM_BRANCHES):
    """Deterministic synthetic init. Linear weights stored transposed: (in, out)."""
    ks = jax.random.split(key, 9)
    s = 0.1
    return {
        # branches[i] : Linear(in, out)
        "W1": s * jax.random.normal(ks[0], (num_branches, in_features, out_features), jnp.float32),
        "b1": s * jax.random.normal(ks[1], (num_branches, out_features), jnp.float32),
        # branch_nonlinear[i] : Linear(out, out) -> ReLU -> Linear(out, out)
        "W2": s * jax.random.normal(ks[2], (num_branches, out_features, out_features), jnp.float32),
        "b2": s * jax.random.normal(ks[3], (num_branches, out_features), jnp.float32),
        "W3": s * jax.random.normal(ks[4], (num_branches, out_features, out_features), jnp.float32),
        "b3": s * jax.random.normal(ks[5], (num_branches, out_features), jnp.float32),
        # output_layer : Linear(out * num_branches, out), stored per-branch slice
        "W_out": s * jax.random.normal(ks[6], (num_branches, out_features, out_features), jnp.float32),
        "b_out": s * jax.random.normal(ks[7], (out_features,), jnp.float32),
        # gate parameters (nn.Parameter(torch.ones(B)), torch.tensor(1.0))
        "branch_gates": jnp.ones((num_branches,), jnp.float32),
        "temperature": jnp.float32(1.0),
    }


def reference_forward(params, x):
    """Pure-JAX f32 reference mirroring the PyTorch forward (edge_index=None)."""
    gates = jax.nn.softmax(params["branch_gates"] / params["temperature"])
    branch_outputs = []
    for i in range(NUM_BRANCHES):
        h = x @ params["W1"][i] + params["b1"][i]
        h = jnp.maximum(h @ params["W2"][i] + params["b2"][i], 0.0)
        h = h @ params["W3"][i] + params["b3"][i]
        branch_outputs.append(h * gates[i])
    concat = jnp.concatenate(branch_outputs, axis=1)
    w_out_full = jnp.concatenate([params["W_out"][i] for i in range(NUM_BRANCHES)], axis=0)
    return concat @ w_out_full + params["b_out"]


if __name__ == "__main__":
    in_features, out_features = 32, 32
    # Not a multiple of 4 (exercises the tiny pack-pad) and not a multiple of
    # the row tile (exercises the ragged final grid block).
    n = 1003

    key = jax.random.PRNGKey(0)
    k_x, k_p = jax.random.split(key)
    x = jax.random.normal(k_x, (n, in_features), jnp.float32)
    params = init_params(k_p, in_features, out_features)

    out = dmcu_dae_forward(params, x)
    out = jax.block_until_ready(out)

    ref = reference_forward(params, x)
    assert out.shape == (n, out_features)
    # bf16 MXU inputs with f32 accumulation -> loosened tolerance vs f32 ref.
    assert np.allclose(np.asarray(out), np.asarray(ref), atol=2e-2, rtol=2e-2)

    print("KERNEL_OK")
</pallas_src>

<mosaic_0001>
module attributes {stable_mosaic.version = 11 : i64} {
  func.func @dmcu_dae_kernel(%arg0: i32, %arg1: memref<128x128xf32, #tpu.memory_space<vmem>>, %arg2: memref<128x512xbf16, #tpu.memory_space<vmem>>, %arg3: memref<1x512xf32, #tpu.memory_space<vmem>>, %arg4: memref<512x128xbf16, #tpu.memory_space<vmem>>, %arg5: memref<1x128xf32, #tpu.memory_space<vmem>>, %arg6: memref<128x128xf32, #tpu.memory_space<vmem>>) attributes {dimension_semantics = [#tpu.dimension_semantics<parallel>], iteration_bounds = array<i64: 2>, scalar_prefetch = 0 : i64, scratch_operands = 0 : i64, tpu.core_type = #tpu.core_type<tc>, window_params = [{transform_indices = @transform_0, window_bounds = array<i64: 128, 128>}, {pipeline_mode = #tpu.pipeline_mode<synchronous>, transform_indices = @transform_1, window_bounds = array<i64: 128, 512>}, {pipeline_mode = #tpu.pipeline_mode<synchronous>, transform_indices = @transform_2, window_bounds = array<i64: 1, 512>}, {pipeline_mode = #tpu.pipeline_mode<synchronous>, transform_indices = @transform_3, window_bounds = array<i64: 512, 128>}, {pipeline_mode = #tpu.pipeline_mode<synchronous>, transform_indices = @transform_4, window_bounds = array<i64: 1, 128>}, {transform_indices = @transform_5, window_bounds = array<i64: 128, 128>}]} {
    %c0 = arith.constant 0 : index
    %c0_0 = arith.constant 0 : index
    %0 = vector.load %arg1[%c0, %c0_0] : memref<128x128xf32, #tpu.memory_space<vmem>>, vector<128x128xf32>
    %1 = arith.truncf %0 : vector<128x128xf32> to vector<128x128xbf16>
    %c0_1 = arith.constant 0 : index
    %c0_2 = arith.constant 0 : index
    %2 = vector.load %arg2[%c0_1, %c0_2] : memref<128x512xbf16, #tpu.memory_space<vmem>>, vector<128x512xbf16>
    %cst = arith.constant dense<0.000000e+00> : vector<128x512xf32>
    %3 = tpu.matmul %1, %2, %cst {dimension_numbers = #tpu.dot_dimension_numbers<[1], [0], [0], [1], [0, 0, 1, 1], [], []>} : vector<128x128xbf16>, vector<128x512xbf16>, vector<128x512xf32> -> vector<128x512xf32>
    %c0_3 = arith.constant 0 : index
    %c0_4 = arith.constant 0 : index
    %4 = vector.load %arg3[%c0_3, %c0_4] : memref<1x512xf32, #tpu.memory_space<vmem>>, vector<1x512xf32>
    %5 = vector.broadcast %4 : vector<1x512xf32> to vector<128x512xf32>
    %6 = arith.addf %3, %5 : vector<128x512xf32>
    %cst_5 = arith.constant 0.000000e+00 : f32
    %7 = vector.broadcast %cst_5 : f32 to vector<128x512xf32>
    %8 = arith.maximumf %6, %7 : vector<128x512xf32>
    %9 = arith.truncf %8 : vector<128x512xf32> to vector<128x512xbf16>
    %c0_6 = arith.constant 0 : index
    %c0_7 = arith.constant 0 : index
    %10 = vector.load %arg4[%c0_6, %c0_7] : memref<512x128xbf16, #tpu.memory_space<vmem>>, vector<512x128xbf16>
    %cst_8 = arith.constant dense<0.000000e+00> : vector<128x128xf32>
    %11 = tpu.matmul %9, %10, %cst_8 {dimension_numbers = #tpu.dot_dimension_numbers<[1], [0], [0], [1], [0, 0, 1, 1], [], []>} : vector<128x512xbf16>, vector<512x128xbf16>, vector<128x128xf32> -> vector<128x128xf32>
    %c0_9 = arith.constant 0 : index
    %c0_10 = arith.constant 0 : index
    %12 = vector.load %arg5[%c0_9, %c0_10] : memref<1x128xf32, #tpu.memory_space<vmem>>, vector<1x128xf32>
    %13 = vector.broadcast %12 : vector<1x128xf32> to vector<128x128xf32>
    %14 = arith.addf %11, %13 : vector<128x128xf32>
    %c0_11 = arith.constant 0 : index
    %c0_12 = arith.constant 0 : index
    %15 = vector.load %arg6[%c0_11, %c0_12] : memref<128x128xf32, #tpu.memory_space<vmem>>, vector<128x128xf32>
    tpu.vector_store %arg6[%c0_11, %c0_12], %14 {strides = array<i32>} : memref<128x128xf32, #tpu.memory_space<vmem>>, vector<128x128xf32>,
    return
  }
  func.func @transform_0(%arg0: i32) -> (i32, i32) {
    %c0_i32 = arith.constant 0 : i32
    %c0_i32_0 = arith.constant 0 : i32
    return %arg0, %c0_i32 : i32, i32
  }
  func.func @transform_1(%arg0: i32) -> (i32, i32) {
    %c0_i32 = arith.constant 0 : i32
    %c0_i32_0 = arith.constant 0 : i32
    %c0_i32_1 = arith.constant 0 : i32
    return %c0_i32, %c0_i32_0 : i32, i32
  }
  func.func @transform_2(%arg0: i32) -> (i32, i32) {
    %c0_i32 = arith.constant 0 : i32
    %c0_i32_0 = arith.constant 0 : i32
    %c0_i32_1 = arith.constant 0 : i32
    return %c0_i32, %c0_i32_0 : i32, i32
  }
  func.func @transform_3(%arg0: i32) -> (i32, i32) {
    %c0_i32 = arith.constant 0 : i32
    %c0_i32_0 = arith.constant 0 : i32
    %c0_i32_1 = arith.constant 0 : i32
    return %c0_i32, %c0_i32_0 : i32, i32
  }
  func.func @transform_4(%arg0: i32) -> (i32, i32) {
    %c0_i32 = arith.constant 0 : i32
    %c0_i32_0 = arith.constant 0 : i32
    %c0_i32_1 = arith.constant 0 : i32
    return %c0_i32, %c0_i32_0 : i32, i32
  }
  func.func @transform_5(%arg0: i32) -> (i32, i32) {
    %c0_i32 = arith.constant 0 : i32
    %c0_i32_0 = arith.constant 0 : i32
    return %arg0, %c0_i32 : i32, i32
  }
}

</mosaic_0001>

<bundles_post_ra>
// kernel: mul.4
= control target key start
LH: loop header
LB: loop body
LE: loop exit
PB: predicated region body
PF: predicated region fallthrough
CT: control target
= control target key end

     0   :  { %vm132_vm0 = vcmask 1047556   ;;  %s338_s15 = smov 96   ;;  %s339_s30 = smov 64   ;;  %vm134_vm1 = vcmask 261120   ;;  %vm171_vm2 = vcmask 1048320   ;;  %vm214_vm3 = vcmask 785920   ;;  %s535_s0 = inlined_call_operand.vmem [shape: f32[32,4,32], index: 0, kind: input, shape index: {}]   ;;  %s536_s1 = inlined_call_operand.vmem [shape: f32[32,128], index: 1, kind: output, shape index: {}]  }
   0x1   :  { %v316_v0 = vld [vmem:[%s535_s0 + $0x1c] sm:$0xf]  ;;  %v317_v1 = vld [vmem:[%s535_s0 + $0x18] sm:$0xf]  ;;  %v318_v2 = vld [vmem:[%s535_s0 + $0x14] sm:$0xf] }
   0x2   :  { %103 = vst [vmem:[#allocation0 + $0x38] sm:$0xf] %v316_v0  ;;  %v319_v3 = vld [vmem:[%s535_s0 + $0x10] sm:$0xf]  ;;  %v320_v4 = vld [vmem:[%s535_s0 + $0xc] sm:$0xf] }
   0x3   :  { %107 = vst [vmem:[#allocation0 + $0x30] sm:$0xf] %v317_v1  ;;  %v321_v5 = vld [vmem:[%s535_s0 + $0x8] sm:$0xf]  ;;  %v322_v6 = vld [vmem:[%s535_s0 + $0x4] sm:$0xf] }
   0x4   :  { %111 = vst [vmem:[#allocation0 + $0x28] sm:$0xf] %v318_v2  ;;  %v128_v7 = vld [vmem:[%s535_s0] sm:$0xf]  ;;  %v300_v8 = vld [vmem:[%s535_s0 + $0x5c] sm:$0xf] }
   0x5   :  { %115 = vst [vmem:[#allocation0 + $0x20] sm:$0xf] %v319_v3  ;;  %v301_v9 = vld [vmem:[%s535_s0 + $0x58] sm:$0xf]  ;;  %v302_v10 = vld [vmem:[%s535_s0 + $0x54] sm:$0xf] }
   0x6   :  { %119 = vst [vmem:[#allocation0 + $0x18] sm:$0xf] %v320_v4  ;;  %v303_v11 = vld [vmem:[%s535_s0 + $0x50] sm:$0xf]  ;;  %v304_v12 = vld [vmem:[%s535_s0 + $0x4c] sm:$0xf] }
   0x7   :  { %123 = vst [vmem:[#allocation0 + $0x10] sm:$0xf] %v321_v5  ;;  %v305_v13 = vld [vmem:[%s535_s0 + $0x48] sm:$0xf]  ;;  %v306_v14 = vld [vmem:[%s535_s0 + $0x44] sm:$0xf] }
   0x8   :  { %127 = vst [vmem:[#allocation0 + $0x8] sm:$0xf] %v322_v6  ;;  %v307_v15 = vld [vmem:[%s535_s0 + $0x40] sm:$0xf]  ;;  %v308_v17 = vld [vmem:[%s535_s0 + $0x3c] sm:$0xf] }
   0x9   :  { %129 = vst [vmem:[#allocation0] sm:$0xf] %v128_v7  ;;  %v309_v18 = vld [vmem:[%s535_s0 + $0x38] sm:$0xf]  ;;  %v310_v21 = vld [vmem:[%s535_s0 + $0x34] sm:$0xf] }
   0xa   :  { %39 = vst [vmem:[#allocation0 + $0xb8] sm:$0xf] %v300_v8  ;;  %v311_v22 = vld [vmem:[%s535_s0 + $0x30] sm:$0xf]  ;;  %v312_v23 = vld [vmem:[%s535_s0 + $0x2c] sm:$0xf] }
   0xb   :  { %43 = vst [vmem:[#allocation0 + $0xb0] sm:$0xf] %v301_v9  ;;  %v313_v24 = vld [vmem:[%s535_s0 + $0x28] sm:$0xf]  ;;  %v314_v25 = vld [vmem:[%s535_s0 + $0x24] sm:$0xf] }
   0xc   :  { %47 = vst [vmem:[#allocation0 + $0xa8] sm:$0xf] %v302_v10  ;;  %v166_v16 = vld [vmem:[#allocation0 + $0x3] ss:$8 sm:$0xf0]   ;;  %vm257_vm4 = vcmask 523520  }
   0xd   :  { %51 = vst [vmem:[#allocation0 + $0xa0] sm:$0xf] %v303_v11  ;;  %v315_v26 = vld [vmem:[%s535_s0 + $0x20] sm:$0xf]  ;;  %v292_v30 = vld [vmem:[%s535_s0 + $0x7c] sm:$0xf] }
   0xe   :  { %55 = vst [vmem:[#allocation0 + $0x98] sm:$0xf] %v304_v12  ;;  %v209_v29 = vld [vmem:[#allocation0 + $0x2] ss:$8 sm:$0xf0]  }
   0xf   :  { %59 = vst [vmem:[#allocation0 + $0x90] sm:$0xf] %v305_v13  ;;  %v293_v31 = vld [vmem:[%s535_s0 + $0x78] sm:$0xf]  ;;  %v294_v35 = vld [vmem:[%s535_s0 + $0x74] sm:$0xf] }
  0x10   :  { %v164_v19 = vld [vmem:[#allocation0 + $0x3] ss:$8 sm:$0xf]   ;;  %63 = vst [vmem:[#allocation0 + $0x88] sm:$0xf] %v306_v14 }
  0x11   :  { %v168_v20 = vsel %vm132_vm0, %v166_v16, %v164_v19  ;;  %67 = vst [vmem:[#allocation0 + $0x80] sm:$0xf] %v307_v15  ;;  %v207_v27 = vld [vmem:[#allocation0 + $0x2] ss:$8 sm:$0xf]  }
  0x12   :  { %169 = vrot.lane.b32.xlu0 %v168_v20, %s338_s15  ;;  %71 = vst [vmem:[#allocation0 + $0x78] sm:$0xf] %v308_v17  ;;  %v211_v32 = vsel %vm132_vm0, %v209_v29, %v207_v27  ;;  %v295_v36 = vld [vmem:[%s535_s0 + $0x70] sm:$0xf]  ;;  %v296_v37 = vld [vmem:[%s535_s0 + $0x6c] sm:$0xf] }
  0x13   :  { %75 = vst [vmem:[#allocation0 + $0x70] sm:$0xf] %v309_v18  ;;  %212 = vrot.lane.b32.xlu2 %v211_v32, %s339_s30  ;;  %v297_v38 = vld [vmem:[%s535_s0 + $0x68] sm:$0xf]  ;;  %v298_v39 = vld [vmem:[%s535_s0 + $0x64] sm:$0xf] }
  0x14   :  { %79 = vst [vmem:[#allocation0 + $0x68] sm:$0xf] %v310_v21  ;;  %v187_v28 = vld [vmem:[#allocation0 + $0x83] ss:$8 sm:$0xf0]  }
  0x15   :  { %83 = vst [vmem:[#allocation0 + $0x60] sm:$0xf] %v311_v22  ;;  %v299_v40 = vld [vmem:[%s535_s0 + $0x60] sm:$0xf]  ;;  %s340_s0 = smov 32  }
  0x16   :  { %87 = vst [vmem:[#allocation0 + $0x58] sm:$0xf] %v312_v23  ;;  %v230_v48 = vld [vmem:[#allocation0 + $0x82] ss:$8 sm:$0xf0]  }
  0x17   :  { %91 = vst [vmem:[#allocation0 + $0x50] sm:$0xf] %v313_v24  ;;  %v250_v49 = vld [vmem:[#allocation0 + $0x1] ss:$8 sm:$0xf]  }
  0x18   :  { %v185_v33 = vld [vmem:[#allocation0 + $0x83] ss:$8 sm:$0xf]   ;;  %95 = vst [vmem:[#allocation0 + $0x48] sm:$0xf] %v314_v25 }
  0x19   :  { %v189_v34 = vsel %vm132_vm0, %v187_v28, %v185_v33  ;;  %99 = vst [vmem:[#allocation0 + $0x40] sm:$0xf] %v315_v26  ;;  %v228_v47 = vld [vmem:[#allocation0 + $0x82] ss:$8 sm:$0xf]  }
  0x1a   :  { %190 = vrot.lane.b32.xlu1 %v189_v34, %s338_s15  ;;  %7 = vst [vmem:[#allocation0 + $0xf8] sm:$0xf] %v292_v30  ;;  %v252_v51 = vld [vmem:[#allocation0 + $0x1] ss:$8 sm:$0xf0]   ;;  %v232_v52 = vsel %vm132_vm0, %v230_v48, %v228_v47 }
  0x1b   :  { %11 = vst [vmem:[#allocation0 + $0xf0] sm:$0xf] %v293_v31  ;;  %v254_v55 = vsel %vm132_vm0, %v252_v51, %v250_v49  ;;  %v271_v1 = vld [vmem:[#allocation0 + $0x81] ss:$8 sm:$0xf]  }
  0x1c   :  { %15 = vst [vmem:[#allocation0 + $0xe8] sm:$0xf] %v294_v35  ;;  %v176_v41 = vld [vmem:[#allocation0 + $0x43] ss:$8 sm:$0xf0]  }
  0x1d   :  { %19 = vst [vmem:[#allocation0 + $0xe0] sm:$0xf] %v295_v36  ;;  %v219_v42 = vld [vmem:[#allocation0 + $0x42] ss:$8 sm:$0xf0]  }
  0x1e   :  { %23 = vst [vmem:[#allocation0 + $0xd8] sm:$0xf] %v296_v37  ;;  %v262_v57 = vld [vmem:[#allocation0 + $0x41] ss:$8 sm:$0xf0]  }
  0x1f   :  { %27 = vst [vmem:[#allocation0 + $0xd0] sm:$0xf] %v297_v38  ;;  %v273_v2 = vld [vmem:[#allocation0 + $0x81] ss:$8 sm:$0xf0]  }
  0x20   :  { %v174_v43 = vld [vmem:[#allocation0 + $0x43] ss:$8 sm:$0xf]   ;;  %31 = vst [vmem:[#allocation0 + $0xc8] sm:$0xf] %v298_v39  ;;  %v275_v3 = vsel %vm132_vm0, %v273_v2, %v271_v1 }
  0x21   :  { %v178_v44 = vsel %vm132_vm0, %v176_v41, %v174_v43  ;;  %35 = vst [vmem:[#allocation0 + $0xc0] sm:$0xf] %v299_v40  ;;  %v217_v45 = vld [vmem:[#allocation0 + $0x42] ss:$8 sm:$0xf]  }
  0x22   :  { %179 = vrot.lane.b32.xlu0 %v178_v44, %s338_s15  ;;  %v221_v46 = vsel %vm132_vm0, %v219_v42, %v217_v45  ;;  %v260_v56 = vld [vmem:[#allocation0 + $0x41] ss:$8 sm:$0xf]   ;;  %v130_v4 = vld [vmem:[#allocation0] ss:$8 sm:$0xf]  }
  0x23   :  { %222 = vrot.lane.b32.xlu2 %v221_v46, %s339_s30  ;;  %v264_v63 = vsel %vm132_vm0, %v262_v57, %v260_v56  ;;  %v131_v5 = vld [vmem:[#allocation0] ss:$8 sm:$0xf0]  }
  0x24   :  { %v198_v50 = vld [vmem:[#allocation0 + $0xc3] ss:$8 sm:$0xf0]   ;;  %v241_v59 = vld [vmem:[#allocation0 + $0xc2] ss:$8 sm:$0xf0]   ;;  %v133_v6 = vsel %vm132_vm0, %v131_v5, %v130_v4 }
  0x25   :  { %v284_v61 = vld [vmem:[#allocation0 + $0xc1] ss:$8 sm:$0xf0]   ;;  %135 = vst.msk [vmem:[%s536_s1] sm:$0xff] %vm134_vm1, %v133_v6  }
  0x26   :  { %v146_v7 = vld [vmem:[#allocation0 + $0x80] ss:$8 sm:$0xf]  }
  0x27   :  { %v148_v8 = vld [vmem:[#allocation0 + $0x80] ss:$8 sm:$0xf0]  }
  0x28   :  { %v196_v53 = vld [vmem:[#allocation0 + $0xc3] ss:$8 sm:$0xf]   ;;  %v239_v58 = vld [vmem:[#allocation0 + $0xc2] ss:$8 sm:$0xf]   ;;  %v150_v9 = vsel %vm132_vm0, %v148_v8, %v146_v7 }
  0x29   :  { %v200_v54 = vsel %vm132_vm0, %v198_v50, %v196_v53  ;;  %v282_v60 = vld [vmem:[#allocation0 + $0xc1] ss:$8 sm:$0xf]   ;;  %v243_v62 = vsel %vm132_vm0, %v241_v59, %v239_v58  ;;  %324 = vst.msk [vmem:[%s536_s1 + $0x10] sm:$0xff] %vm134_vm1, %v150_v9  }
  0x2a   :  { %201 = vrot.lane.b32.xlu1 %v200_v54, %s338_s15  ;;  %233 = vrot.lane.b32.xlu0 %v232_v52, %s339_s30  ;;  %v286_v0 = vsel %vm132_vm0, %v284_v61, %v282_v60  ;;  %v137_v11 = vld [vmem:[#allocation0 + $0x40] ss:$8 sm:$0xf]  }
  0x2b   :  { %255 = vrot.lane.b32.xlu2 %v254_v55, %s340_s0  ;;  %v139_v12 = vld [vmem:[#allocation0 + $0x40] ss:$8 sm:$0xf0]  }
  0x2c   :  { %v141_v13 = vsel %vm132_vm0, %v139_v12, %v137_v11  ;;  %v155_v14 = vld [vmem:[#allocation0 + $0xc0] ss:$8 sm:$0xf]  }
  0x2d   :  { %323 = vst.msk [vmem:[%s536_s1 + $0x8] sm:$0xff] %vm134_vm1, %v141_v13   ;;  %v157_v15 = vld [vmem:[#allocation0 + $0xc0] ss:$8 sm:$0xf0]  }
  0x2e   :  { %v159_v16 = vsel %vm132_vm0, %v157_v15, %v155_v14 }
  0x2f   :  { %325 = vst.msk [vmem:[%s536_s1 + $0x18] sm:$0xff] %vm134_vm1, %v159_v16  }
  0x32   :  { %244 = vrot.lane.b32.xlu1 %v243_v62, %s339_s30  ;;  %265 = vrot.lane.b32.xlu0 %v264_v63, %s340_s0 }
  0x33   :  { %287 = vrot.lane.b32.xlu2 %v286_v0, %s340_s0 }
  0x3a   :  { %276 = vrot.lane.b32.xlu1 %v275_v3, %s340_s0 }
  0x6d   :  { %v213_v10 = vpop.permute.xlu2 %212  }
  0x7d   :  { %v223_v17 = vpop.permute.xlu2 %222  }
  0x84   :  { %v170_v18 = vpop.permute.xlu0 %169  }
  0x85   :  { %172 = vst.msk [vmem:[%s536_s1] sm:$0xff] %vm171_vm2, %v170_v18   ;;  %v256_v19 = vpop.permute.xlu2 %255  }
  0x86   :  { %215 = vst.msk [vmem:[%s536_s1] sm:$0xff] %vm214_vm3, %v213_v10  }
  0x87   :  { %258 = vst.msk [vmem:[%s536_s1] sm:$0xff] %vm257_vm4, %v256_v19  }
  0x8c   :  { %v191_v20 = vpop.permute.xlu1 %190  }
  0x8d   :  { %327 = vst.msk [vmem:[%s536_s1 + $0x10] sm:$0xff] %vm171_vm2, %v191_v20   ;;  %v288_v21 = vpop.permute.xlu2 %287  }
  0x94   :  { %v180_v22 = vpop.permute.xlu0 %179  }
  0x95   :  { %326 = vst.msk [vmem:[%s536_s1 + $0x8] sm:$0xff] %vm171_vm2, %v180_v22  }
  0x96   :  { %329 = vst.msk [vmem:[%s536_s1 + $0x8] sm:$0xff] %vm214_vm3, %v223_v17  }
  0x9c   :  { %v202_v23 = vpop.permute.xlu1 %201   ;;  %v234_v24 = vpop.permute.xlu0 %233  }
  0x9d   :  { %328 = vst.msk [vmem:[%s536_s1 + $0x18] sm:$0xff] %vm171_vm2, %v202_v23  }
  0x9e   :  { %330 = vst.msk [vmem:[%s536_s1 + $0x10] sm:$0xff] %vm214_vm3, %v234_v24  }
  0xa4   :  { %v245_v25 = vpop.permute.xlu1 %244   ;;  %v266_v26 = vpop.permute.xlu0 %265  }
  0xa5   :  { %331 = vst.msk [vmem:[%s536_s1 + $0x18] sm:$0xff] %vm214_vm3, %v245_v25  }
  0xa6   :  { %332 = vst.msk [vmem:[%s536_s1 + $0x8] sm:$0xff] %vm257_vm4, %v266_v26  }
  0xa7   :  { %334 = vst.msk [vmem:[%s536_s1 + $0x18] sm:$0xff] %vm257_vm4, %v288_v21  }
  0xac   :  { %v277_v27 = vpop.permute.xlu1 %276  }
  0xad   :  { %333 = vst.msk [vmem:[%s536_s1 + $0x10] sm:$0xff] %vm257_vm4, %v277_v27  }

// kernel: dmcu_dae_forward.1
= control target key start
LH: loop header
LB: loop body
LE: loop exit
PB: predicated region body
PF: predicated region fallthrough
CT: control target
= control target key end

     0   :  { %s1652_s18 = smov 0   ;;  %s2098_s0 = inlined_call_operand.vmem [shape: f32[251,128], index: 0, kind: input, shape index: {}]   ;;  %s2099_s1 = inlined_call_operand.vmem [shape: bf16[128,512], index: 1, kind: input, shape index: {}]   ;;  %s2100_s2 = inlined_call_operand.vmem [shape: f32[1,512], index: 2, kind: input, shape index: {}]   ;;  %s2101_s3 = inlined_call_operand.vmem [shape: bf16[512,128], index: 3, kind: input, shape index: {}]   ;;  %s2102_s4 = inlined_call_operand.vmem [shape: f32[1,128], index: 4, kind: input, shape index: {}]   ;;  %s2103_s5 = inlined_call_operand.vmem [shape: f32[251,128], index: 5, kind: output, shape index: {}]  }
   0x1 LB: > { %s1274_s19 = sadd.s32 4294967295, %s1620_s18   ;;  %p1278_p0 = scmp.ge.s32.totalorder %s1620_s18, 1  ;;  %s1620_s18 = sphi %s1652_s18, %s15_s18  }
   0x2   : > { %p188_p1 = scmp.lt.s32.totalorder %s1620_s18, 3 }
   0x4   : > { %p189_p2 = pnand %p1278_p0, %p188_p1 }
   0x5   : > { %s1279_s13 = sshll.u32 (!%p189_p2), %s1274_s19, 4 }
   0x6   : > { %192 = sbr.rel (%p189_p2) target bundleno = 449 (0x1c1), region = 40  ;;  %p217_p3 = scmp.lt.s32.totalorder (!%p189_p2), %s1279_s13, 31 }
   0xb   : > { %v1397_v0 = vld [vmem:[%s2099_s1 + $0xe0] sm:$0xf]  ;;  %v1571_v1 = vld [vmem:[%s2099_s1 + $0xec] sm:$0xf0]  ;;  %v1569_v2 = vld [vmem:[%s2099_s1 + $0xe4] sm:$0xf] }
   0xc   : > { %v1398_v3 = vor.u32 %v1571_v1, %v1397_v0  ;;  %v1399_v4 = vld [vmem:[%s2099_s1 + $0xf0] sm:$0xf0]  ;;  %v1405_v5 = vld [vmem:[%s2099_s1 + $0xe8] sm:$0xf]  ;;  %v1572_v6 = vld [vmem:[%s2099_s1 + $0xf4] sm:$0xf0] }
   0xd   : > { %v1402_v7 = vor.u32 %v1569_v2, %v1399_v4  ;;  %v1406_v8 = vor.u32 %v1572_v6, %v1405_v5  ;;  %v1570_v9 = vld [vmem:[%s2099_s1 + $0xec] sm:$0xf]  ;;  %v1407_v10 = vld [vmem:[%s2099_s1 + $0xf8] sm:$0xf0]  ;;  %v1381_v11 = vld [vmem:[%s2099_s1 + $0xc0] sm:$0xf] }
   0xe   : > { %454 = vmatpush.bf16.msra.mxu0 %v1398_v3  ;;  %v1410_v12 = vor.u32 %v1570_v9, %v1407_v10  ;;  %v1567_v13 = vld [vmem:[%s2099_s1 + $0xcc] sm:$0xf0]  ;;  %v1565_v14 = vld [vmem:[%s2099_s1 + $0xc4] sm:$0xf]  ;;  %v1383_v15 = vld [vmem:[%s2099_s1 + $0xd0] sm:$0xf0] }
   0xf   : > { %503 = vmatpush.bf16.msra.mxu1 %v1402_v7  ;;  %552 = vmatpush.bf16.msra.mxu2 %v1406_v8  ;;  %v1382_v16 = vor.u32 %v1567_v13, %v1381_v11  ;;  %v1386_v17 = vor.u32 %v1565_v14, %v1383_v15  ;;  %v1389_v18 = vld [vmem:[%s2099_s1 + $0xc8] sm:$0xf]  ;;  %v1568_v19 = vld [vmem:[%s2099_s1 + $0xd4] sm:$0xf0]  ;;  %v1566_v20 = vld [vmem:[%s2099_s1 + $0xcc] sm:$0xf] }
  0x10   : > { %601 = vmatpush.bf16.msra.mxu3 %v1410_v12  ;;  %v1390_v21 = vor.u32 %v1568_v19, %v1389_v18  ;;  %v1391_v22 = vld [vmem:[%s2099_s1 + $0xd8] sm:$0xf0]  ;;  %v1365_v23 = vld [vmem:[%s2099_s1 + $0xa0] sm:$0xf]  ;;  %v1563_v24 = vld [vmem:[%s2099_s1 + $0xac] sm:$0xf0] }
  0x11   : > { %v1394_v25 = vor.u32 %v1566_v20, %v1391_v22  ;;  %v1561_v26 = vld [vmem:[%s2099_s1 + $0xa4] sm:$0xf]  ;;  %v1367_v27 = vld [vmem:[%s2099_s1 + $0xb0] sm:$0xf0]  ;;  %v1373_v28 = vld [vmem:[%s2099_s1 + $0xa8] sm:$0xf]  ;;  %v1366_v29 = vor.u32 %v1563_v24, %v1365_v23 }
  0x12   : > { %455 = vmatpush.bf16.msra.mxu0 %v1382_v16  ;;  %v1564_v30 = vld [vmem:[%s2099_s1 + $0xb4] sm:$0xf0]  ;;  %v1562_v31 = vld [vmem:[%s2099_s1 + $0xac] sm:$0xf]  ;;  %v1375_v32 = vld [vmem:[%s2099_s1 + $0xb8] sm:$0xf0]  ;;  %v1370_v33 = vor.u32 %v1561_v26, %v1367_v27 }
  0x13   : > { %504 = vmatpush.bf16.msra.mxu1 %v1386_v17  ;;  %553 = vmatpush.bf16.msra.mxu2 %v1390_v21  ;;  %v1374_v34 = vor.u32 %v1564_v30, %v1373_v28  ;;  %v1349_v35 = vld [vmem:[%s2099_s1 + $0x80] sm:$0xf]  ;;  %v1559_v36 = vld [vmem:[%s2099_s1 + $0x8c] sm:$0xf0]  ;;  %v1557_v37 = vld [vmem:[%s2099_s1 + $0x84] sm:$0xf]  ;;  %v1378_v38 = vor.u32 %v1562_v31, %v1375_v32 }
  0x14   : > { %602 = vmatpush.bf16.msra.mxu3 %v1394_v25  ;;  %v1351_v39 = vld [vmem:[%s2099_s1 + $0x90] sm:$0xf0]  ;;  %v1357_v40 = vld [vmem:[%s2099_s1 + $0x88] sm:$0xf]  ;;  %v1560_v41 = vld [vmem:[%s2099_s1 + $0x94] sm:$0xf0]  ;;  %v1350_v44 = vor.u32 %v1559_v36, %v1349_v35 }
  0x15   : > { %v1558_v42 = vld [vmem:[%s2099_s1 + $0x8c] sm:$0xf]  ;;  %v1359_v43 = vld [vmem:[%s2099_s1 + $0x98] sm:$0xf0]  ;;  %v1354_v45 = vor.u32 %v1557_v37, %v1351_v39  ;;  %v1358_v46 = vor.u32 %v1560_v41, %v1357_v40  ;;  %v1333_v47 = vld [vmem:[%s2099_s1 + $0x60] sm:$0xf] }
  0x16   : > { %456 = vmatpush.bf16.msra.mxu0 %v1366_v29  ;;  %v1555_v48 = vld [vmem:[%s2099_s1 + $0x6c] sm:$0xf0]  ;;  %v1553_v49 = vld [vmem:[%s2099_s1 + $0x64] sm:$0xf]  ;;  %v1362_v50 = vor.u32 %v1558_v42, %v1359_v43  ;;  %v1335_v51 = vld [vmem:[%s2099_s1 + $0x70] sm:$0xf0] }
  0x17   : > { %505 = vmatpush.bf16.msra.mxu1 %v1370_v33  ;;  %554 = vmatpush.bf16.msra.mxu2 %v1374_v34  ;;  %v1341_v52 = vld [vmem:[%s2099_s1 + $0x68] sm:$0xf]  ;;  %v1556_v53 = vld [vmem:[%s2099_s1 + $0x74] sm:$0xf0]  ;;  %v1554_v54 = vld [vmem:[%s2099_s1 + $0x6c] sm:$0xf]  ;;  %v1334_v56 = vor.u32 %v1555_v48, %v1333_v47  ;;  %v1338_v57 = vor.u32 %v1553_v49, %v1335_v51 }
  0x18   : > { %603 = vmatpush.bf16.msra.mxu3 %v1378_v38  ;;  %v1343_v55 = vld [vmem:[%s2099_s1 + $0x78] sm:$0xf0]  ;;  %v1342_v58 = vor.u32 %v1556_v53, %v1341_v52  ;;  %v1317_v59 = vld [vmem:[%s2099_s1 + $0x40] sm:$0xf]  ;;  %v1551_v60 = vld [vmem:[%s2099_s1 + $0x4c] sm:$0xf0] }
  0x19   : > { %v1549_v61 = vld [vmem:[%s2099_s1 + $0x44] sm:$0xf]  ;;  %v1346_v62 = vor.u32 %v1554_v54, %v1343_v55  ;;  %v1319_v63 = vld [vmem:[%s2099_s1 + $0x50] sm:$0xf0]  ;;  %v1325_v0 = vld [vmem:[%s2099_s1 + $0x48] sm:$0xf]  ;;  %v1318_v4 = vor.u32 %v1551_v60, %v1317_v59 }
  0x1a   : > { %457 = vmatpush.bf16.msra.mxu0 %v1350_v44  ;;  %v1552_v1 = vld [vmem:[%s2099_s1 + $0x54] sm:$0xf0]  ;;  %v1550_v2 = vld [vmem:[%s2099_s1 + $0x4c] sm:$0xf]  ;;  %v1327_v3 = vld [vmem:[%s2099_s1 + $0x58] sm:$0xf0]  ;;  %v1322_v7 = vor.u32 %v1549_v61, %v1319_v63 }
  0x1b   : > { %506 = vmatpush.bf16.msra.mxu1 %v1354_v45  ;;  %555 = vmatpush.bf16.msra.mxu2 %v1358_v46  ;;  %v1301_v5 = vld [vmem:[%s2099_s1 + $0x20] sm:$0xf]  ;;  %v1547_v6 = vld [vmem:[%s2099_s1 + $0x2c] sm:$0xf0]  ;;  %v1326_v8 = vor.u32 %v1552_v1, %v1325_v0  ;;  %v1545_v9 = vld [vmem:[%s2099_s1 + $0x24] sm:$0xf]  ;;  %v1330_v12 = vor.u32 %v1550_v2, %v1327_v3 }
  0x1c   : > { %604 = vmatpush.bf16.msra.mxu3 %v1362_v50  ;;  %v1303_v10 = vld [vmem:[%s2099_s1 + $0x30] sm:$0xf0]  ;;  %v1309_v11 = vld [vmem:[%s2099_s1 + $0x28] sm:$0xf]  ;;  %v1548_v13 = vld [vmem:[%s2099_s1 + $0x34] sm:$0xf0]  ;;  %v1302_v16 = vor.u32 %v1547_v6, %v1301_v5 }
  0x1d   : > { %v1546_v14 = vld [vmem:[%s2099_s1 + $0x2c] sm:$0xf]  ;;  %v1311_v15 = vld [vmem:[%s2099_s1 + $0x38] sm:$0xf0]  ;;  %v1285_v17 = vld [vmem:[%s2099_s1] sm:$0xf]  ;;  %v1306_v18 = vor.u32 %v1545_v9, %v1303_v10  ;;  %v1310_v19 = vor.u32 %v1548_v13, %v1309_v11 }
  0x1e   : > { %458 = vmatpush.bf16.msra.mxu0 %v1334_v56  ;;  %v1543_v20 = vld [vmem:[%s2099_s1 + $0xc] sm:$0xf0]  ;;  %v1541_v21 = vld [vmem:[%s2099_s1 + $0x4] sm:$0xf]  ;;  %s2105_s13 = smov (!%p217_p3, %s1279_s13), 31  ;;  %v1314_v22 = vor.u32 %v1546_v14, %v1311_v15  ;;  %v1596_v34 = vld [vmem:[%s2101_s3 + $0xb8] sm:$0xff] }
  0x1f   : > { %507 = vmatpush.bf16.msra.mxu1 %v1338_v57  ;;  %556 = vmatpush.bf16.msra.mxu2 %v1342_v58  ;;  %v1287_v23 = vld [vmem:[%s2099_s1 + $0x10] sm:$0xf0]  ;;  %v1293_v24 = vld [vmem:[%s2099_s1 + $0x8] sm:$0xf]  ;;  %v1544_v25 = vld [vmem:[%s2099_s1 + $0x14] sm:$0xf0]  ;;  %v1286_v28 = vor.u32 %v1543_v20, %v1285_v17 }
  0x20   : > { %605 = vmatpush.bf16.msra.mxu3 %v1346_v62  ;;  %v1542_v26 = vld [vmem:[%s2099_s1 + $0xc] sm:$0xf]  ;;  %v1295_v27 = vld [vmem:[%s2099_s1 + $0x18] sm:$0xf0]  ;;  %s1280_s8 = sshll.u32 %s2105_s13, 3  ;;  %v1290_v29 = vor.u32 %v1541_v21, %v1287_v23  ;;  %v1294_v30 = vor.u32 %v1544_v25, %v1293_v24  ;;  %v1595_v39 = vld [vmem:[%s2101_s3 + $0xb0] sm:$0xff] }
  0x21   : > { %s1862_s11 = scalar_lea.vmem %s2098_s0, %s1280_s8  ;;  %v1298_v33 = vor.u32 %v1542_v26, %v1295_v27  ;;  %v1604_v36 = vld [vmem:[%s2101_s3 + $0xf8] sm:$0xff]  ;;  %v1579_v40 = vld [vmem:[%s2101_s3 + $0x30] sm:$0xff]  ;;  %v1594_v46 = vld [vmem:[%s2101_s3 + $0xa8] sm:$0xff]  ;;  %s2062_s21 = scalar_lea.vmem %s2103_s5, %s1280_s8 }
  0x22   : > { %459 = vmatpush.bf16.msra.mxu0 %v1318_v4  ;;  %v228_v31 = vld [vmem:[%s1862_s11] sm:$0xff]  ;;  %v229_v32 = vld [vmem:[%s1862_s11 + $0x8] sm:$0xff]  ;;  %v1580_v37 = vld [vmem:[%s2101_s3 + $0x38] sm:$0xff] }
  0x23   : > { %508 = vmatpush.bf16.msra.mxu1 %v1322_v7  ;;  %557 = vmatpush.bf16.msra.mxu2 %v1326_v8  ;;  %v244_v35 = vpack.c.bf16 %v229_v32, %v228_v31  ;;  %v1588_v38 = vld [vmem:[%s2101_s3 + $0x78] sm:$0xff]  ;;  %v1603_v41 = vld [vmem:[%s2101_s3 + $0xf0] sm:$0xff]  ;;  %v1578_v47 = vld [vmem:[%s2101_s3 + $0x28] sm:$0xff] }
  0x24   : > { %606 = vmatpush.bf16.msra.mxu3 %v1330_v12  ;;  %v1587_v42 = vld [vmem:[%s2101_s3 + $0x70] sm:$0xff]  ;;  %v231_v44 = vld [vmem:[%s1862_s11 + $0x18] sm:$0xff]  ;;  %v1602_v48 = vld [vmem:[%s2101_s3 + $0xe8] sm:$0xff] }
  0x25   : > { %v230_v43 = vld [vmem:[%s1862_s11 + $0x10] sm:$0xff]  ;;  %v1586_v49 = vld [vmem:[%s2101_s3 + $0x68] sm:$0xff]  ;;  %v232_v50 = vld [vmem:[%s1862_s11 + $0x20] sm:$0xff] }
  0x26   : > { %460 = vmatpush.bf16.msra.mxu0 %v1302_v16  ;;  %v245_v45 = vpack.c.bf16 %v231_v44, %v230_v43  ;;  %v233_v51 = vld [vmem:[%s1862_s11 + $0x28] sm:$0xff]  ;;  %v1593_v53 = vld [vmem:[%s2101_s3 + $0xa0] sm:$0xff]  ;;  %v234_v57 = vld [vmem:[%s1862_s11 + $0x30] sm:$0xff] }
  0x27   : > { %509 = vmatpush.bf16.msra.mxu1 %v1306_v18  ;;  %558 = vmatpush.bf16.msra.mxu2 %v1310_v19  ;;  %v246_v52 = vpack.c.bf16 %v233_v51, %v232_v50  ;;  %v1577_v54 = vld [vmem:[%s2101_s3 + $0x20] sm:$0xff]  ;;  %v235_v58 = vld [vmem:[%s1862_s11 + $0x38] sm:$0xff]  ;;  %v237_v1 = vld [vmem:[%s1862_s11 + $0x48] sm:$0xff] }
  0x28   : > { %607 = vmatpush.bf16.msra.mxu3 %v1314_v22  ;;  %v1601_v55 = vld [vmem:[%s2101_s3 + $0xe0] sm:$0xff]  ;;  %v247_v59 = vpack.c.bf16 %v235_v58, %v234_v57  ;;  %v1592_v60 = vld [vmem:[%s2101_s3 + $0x98] sm:$0xff]  ;;  %v1591_v3 = vld [vmem:[%s2101_s3 + $0x90] sm:$0xff] }
  0x29   : > { %v1585_v56 = vld [vmem:[%s2101_s3 + $0x60] sm:$0xff]  ;;  %v1576_v61 = vld [vmem:[%s2101_s3 + $0x18] sm:$0xff]  ;;  %v1575_v4 = vld [vmem:[%s2101_s3 + $0x10] sm:$0xff] }
  0x2a   : > { %461 = vmatpush.bf16.msra.mxu0 %v1286_v28  ;;  %v1600_v62 = vld [vmem:[%s2101_s3 + $0xd8] sm:$0xff]  ;;  %v236_v0 = vld [vmem:[%s1862_s11 + $0x40] sm:$0xff]  ;;  %v1599_v5 = vld [vmem:[%s2101_s3 + $0xd0] sm:$0xff] }
  0x2b   : > { %510 = vmatpush.bf16.msra.mxu1 %v1290_v29  ;;  %559 = vmatpush.bf16.msra.mxu2 %v1294_v30  ;;  %v1584_v63 = vld [vmem:[%s2101_s3 + $0x58] sm:$0xff]  ;;  %v248_v2 = vpack.c.bf16 %v237_v1, %v236_v0  ;;  %v1583_v6 = vld [vmem:[%s2101_s3 + $0x50] sm:$0xff]  ;;  %v1590_v10 = vld [vmem:[%s2101_s3 + $0x88] sm:$0xff] }
  0x2c   : > { %608 = vmatpush.bf16.msra.mxu3 %v1298_v33  ;;  %v238_v7 = vld [vmem:[%s1862_s11 + $0x50] sm:$0xff]  ;;  %v239_v8 = vld [vmem:[%s1862_s11 + $0x58] sm:$0xff]  ;;  %v1574_v11 = vld [vmem:[%s2101_s3 + $0x8] sm:$0xff] }
  0x2d   : > { %462 = vmatmul.bf16.vlgmr.msra.gmra.mxu0 %v244_v35  ;;  %v249_v9 = vpack.c.bf16 %v239_v8, %v238_v7  ;;  %v1598_v12 = vld [vmem:[%s2101_s3 + $0xc8] sm:$0xff]  ;;  %v240_v14 = vld [vmem:[%s1862_s11 + $0x60] sm:$0xff]  ;;  %v242_v20 = vld [vmem:[%s1862_s11 + $0x70] sm:$0xff] }
  0x2e   : > { %511 = vmatmul.bf16.vlgmr.msra.gmra.mxu1 %v244_v35  ;;  %560 = vmatmul.bf16.vlgmr.msra.gmra.mxu2 %v244_v35  ;;  %v1582_v13 = vld [vmem:[%s2101_s3 + $0x48] sm:$0xff]  ;;  %v1589_v17 = vld [vmem:[%s2101_s3 + $0x80] sm:$0xff]  ;;  %v243_v21 = vld [vmem:[%s1862_s11 + $0x78] sm:$0xff] }
  0x2f   : > { %1104 = vmatpush.bf16.msrb.mxu2 %v1596_v34  ;;  %609 = vmatmul.bf16.vlgmr.msra.gmra.mxu3 %v244_v35  ;;  %v241_v15 = vld [vmem:[%s1862_s11 + $0x68] sm:$0xff]  ;;  %v1573_v18 = vld [vmem:[%s2101_s3] sm:$0xff]  ;;  %v251_v23 = vpack.c.bf16 %v243_v21, %v242_v20 }
  0x30   : > { %1153 = vmatpush.bf16.msrb.mxu3 %v1604_v36  ;;  %1006 = vmatpush.bf16.msrb.mxu0 %v1580_v37  ;;  %v250_v16 = vpack.c.bf16 %v241_v15, %v240_v14  ;;  %v1597_v19 = vld [vmem:[%s2101_s3 + $0xc0] sm:$0xff] }
  0x31   : > { %1055 = vmatpush.bf16.msrb.mxu1 %v1588_v38  ;;  %v1581_v22 = vld [vmem:[%s2101_s3 + $0x40] sm:$0xff] }
  0x32   : > { %v284_v24 = vld [vmem:[%s2100_s2] sm:$0xf] }
  0x33   : > { %1105 = vmatpush.bf16.msrb.mxu2 %v1595_v39  ;;  %v1979_v26 = vperm.slane %v284_v24, 0  ;;  %v1981_v28 = vperm.slane %v284_v24, 1  ;;  %v1986_v38 = vperm.slane %v284_v24, 2 }
  0x34   : > { %1154 = vmatpush.bf16.msrb.mxu3 %v1603_v41  ;;  %1007 = vmatpush.bf16.msrb.mxu0 %v1579_v40  ;;  %v1989_v40 = vperm.slane %v284_v24, 3 }
  0x35   : > { %1056 = vmatpush.bf16.msrb.mxu1 %v1587_v42 }
  0x37   : > { %1106 = vmatpush.bf16.msrb.mxu2 %v1594_v46 }
  0x38   : > { %1008 = vmatpush.bf16.msrb.mxu0 %v1578_v47  ;;  %1155 = vmatpush.bf16.msrb.mxu3 %v1602_v48 }
  0x39   : > { %1057 = vmatpush.bf16.msrb.mxu1 %v1586_v49 }
  0x3b   : > { %1107 = vmatpush.bf16.msrb.mxu2 %v1593_v53 }
  0x3c   : > { %1009 = vmatpush.bf16.msrb.mxu0 %v1577_v54  ;;  %1156 = vmatpush.bf16.msrb.mxu3 %v1601_v55 }
  0x3d   : > { %467 = vmatmul.bf16.gmra.mxu0 %v245_v45  ;;  %1058 = vmatpush.bf16.msrb.mxu1 %v1585_v56 }
  0x3e   : > { %516 = vmatmul.bf16.gmra.mxu1 %v245_v45  ;;  %565 = vmatmul.bf16.gmra.mxu2 %v245_v45 }
  0x3f   : > { %614 = vmatmul.bf16.gmra.mxu3 %v245_v45  ;;  %1108 = vmatpush.bf16.msrb.mxu2 %v1592_v60 }
  0x40   : > { %1010 = vmatpush.bf16.msrb.mxu0 %v1576_v61  ;;  %1157 = vmatpush.bf16.msrb.mxu3 %v1600_v62 }
  0x41   : > { %1059 = vmatpush.bf16.msrb.mxu1 %v1584_v63 }
  0x43   : > { %1109 = vmatpush.bf16.msrb.mxu2 %v1591_v3 }
  0x44   : > { %1011 = vmatpush.bf16.msrb.mxu0 %v1575_v4  ;;  %1158 = vmatpush.bf16.msrb.mxu3 %v1599_v5 }
  0x45   : > { %1060 = vmatpush.bf16.msrb.mxu1 %v1583_v6 }
  0x47   : > { %1110 = vmatpush.bf16.msrb.mxu2 %v1590_v10 }
  0x48   : > { %1012 = vmatpush.bf16.msrb.mxu0 %v1574_v11  ;;  %1159 = vmatpush.bf16.msrb.mxu3 %v1598_v12 }
  0x49   : > { %1061 = vmatpush.bf16.msrb.mxu1 %v1582_v13 }
  0x4b   : > { %1111 = vmatpush.bf16.msrb.mxu2 %v1589_v17 }
  0x4c   : > { %1013 = vmatpush.bf16.msrb.mxu0 %v1573_v18  ;;  %1160 = vmatpush.bf16.msrb.mxu3 %v1597_v19 }
  0x4d   : > { %472 = vmatmul.bf16.gmra.mxu0 %v246_v52  ;;  %1062 = vmatpush.bf16.msrb.mxu1 %v1581_v22 }
  0x4e   : > { %521 = vmatmul.bf16.gmra.mxu1 %v246_v52  ;;  %570 = vmatmul.bf16.gmra.mxu2 %v246_v52 }
  0x4f   : > { %619 = vmatmul.bf16.gmra.mxu3 %v246_v52 }
  0x5d   : > { %477 = vmatmul.bf16.gmra.mxu0 %v247_v59 }
  0x5e   : > { %526 = vmatmul.bf16.gmra.mxu1 %v247_v59  ;;  %575 = vmatmul.bf16.gmra.mxu2 %v247_v59 }
  0x5f   : > { %624 = vmatmul.bf16.gmra.mxu3 %v247_v59 }
  0x6d   : > { %482 = vmatmul.bf16.gmra.mxu0 %v248_v2 }
  0x6e   : > { %531 = vmatmul.bf16.gmra.mxu1 %v248_v2  ;;  %580 = vmatmul.bf16.gmra.mxu2 %v248_v2 }
  0x6f   : > { %629 = vmatmul.bf16.gmra.mxu3 %v248_v2 }
  0x7d   : > { %487 = vmatmul.bf16.gmra.mxu0 %v249_v9 }
  0x7e   : > { %536 = vmatmul.bf16.gmra.mxu1 %v249_v9  ;;  %585 = vmatmul.bf16.gmra.mxu2 %v249_v9 }
  0x7f   : > { %634 = vmatmul.bf16.gmra.mxu3 %v249_v9 }
  0x8d   : > { %492 = vmatmul.bf16.gmra.mxu0 %v250_v16 }
  0x8e   : > { %541 = vmatmul.bf16.gmra.mxu1 %v250_v16  ;;  %590 = vmatmul.bf16.gmra.mxu2 %v250_v16 }
  0x8f   : > { %639 = vmatmul.bf16.gmra.mxu3 %v250_v16 }
  0x9d   : > { %497 = vmatmul.bf16.gmra.mxu0 %v251_v23 }
  0x9e   : > { %546 = vmatmul.bf16.gmra.mxu1 %v251_v23  ;;  %595 = vmatmul.bf16.gmra.mxu2 %v251_v23 }
  0x9f   : > { %644 = vmatmul.bf16.gmra.mxu3 %v251_v23 }
  0xaa   : > { %v463_v25 = vpop.f32.mrf.mxu0 }
  0xab   : > { %v512_v27 = vpop.f32.mrf.mxu1  ;;  %v464_v29 = vadd.f32 %v463_v25, %v1979_v26 }
  0xac   : > { %v513_v30 = vadd.f32 %v512_v27, %v1981_v28 }
  0xad   : > { %v650_v34 = vmax.f32 %v464_v29, 0.0 }
  0xae   : > { %v651_v37 = vmax.f32 %v513_v30, 0.0 }
  0xb1   : > { %v561_v31 = vpop.f32.mrf.mxu2 }
  0xb2   : > { %v610_v32 = vpop.f32.mrf.mxu3  ;;  %v465_v33 = vpop.f32.mrf.mxu0  ;;  %v562_v44 = vadd.f32 %v561_v31, %v1986_v38 }
  0xb3   : > { %v466_v35 = vadd.f32 %v465_v33, %v1979_v26  ;;  %v514_v36 = vpop.f32.mrf.mxu1  ;;  %v611_v46 = vadd.f32 %v610_v32, %v1989_v40 }
  0xb4   : > { %v515_v39 = vadd.f32 %v514_v36, %v1981_v28  ;;  %v652_v53 = vmax.f32 %v562_v44, 0.0 }
  0xb5   : > { %v654_v41 = vmax.f32 %v466_v35, 0.0  ;;  %v653_v55 = vmax.f32 %v611_v46, 0.0 }
  0xb6   : > { %v655_v42 = vmax.f32 %v515_v39, 0.0 }
  0xb7   : > { %v714_v43 = vpack.c.bf16 %v654_v41, %v650_v34 }
  0xb8   : > { %v715_v45 = vpack.c.bf16 %v655_v42, %v651_v37 }
  0xb9   : > { %v563_v47 = vpop.f32.mrf.mxu2  ;;  %1014 = vmatmul.bf16.vlgmr.msrb.gmra.mxu0 %v714_v43 }
  0xba   : > { %v564_v48 = vadd.f32 %v563_v47, %v1986_v38  ;;  %v612_v49 = vpop.f32.mrf.mxu3  ;;  %1063 = vmatmul.bf16.vlgmr.msrb.gmra.mxu1 %v715_v45  ;;  %v468_v50 = vpop.f32.mrf.mxu0 }
  0xbb   : > { %v613_v51 = vadd.f32 %v612_v49, %v1989_v40  ;;  %v517_v52 = vpop.f32.mrf.mxu1  ;;  %v469_v58 = vadd.f32 %v468_v50, %v1979_v26 }
  0xbc   : > { %v656_v54 = vmax.f32 %v564_v48, 0.0  ;;  %v518_v60 = vadd.f32 %v517_v52, %v1981_v28 }
  0xbd   : > { %v657_v56 = vmax.f32 %v613_v51, 0.0  ;;  %v658_v0 = vmax.f32 %v469_v58, 0.0 }
  0xbe   : > { %v716_v57 = vpack.c.bf16 %v656_v54, %v652_v53  ;;  %v659_v3 = vmax.f32 %v518_v60, 0.0 }
  0xbf   : > { %v717_v59 = vpack.c.bf16 %v657_v56, %v653_v55 }
  0xc0   : > { %1112 = vmatmul.bf16.vlgmr.msrb.gmra.mxu2 %v716_v57 }
  0xc1   : > { %1161 = vmatmul.bf16.vlgmr.msrb.gmra.mxu3 %v717_v59  ;;  %v566_v61 = vpop.f32.mrf.mxu2 }
  0xc2   : > { %v615_v62 = vpop.f32.mrf.mxu3  ;;  %v470_v63 = vpop.f32.mrf.mxu0  ;;  %v567_v8 = vadd.f32 %v566_v61, %v1986_v38 }
  0xc3   : > { %v471_v1 = vadd.f32 %v470_v63, %v1979_v26  ;;  %v519_v2 = vpop.f32.mrf.mxu1  ;;  %v616_v10 = vadd.f32 %v615_v62, %v1989_v40 }
  0xc4   : > { %v520_v4 = vadd.f32 %v519_v2, %v1981_v28  ;;  %v660_v17 = vmax.f32 %v567_v8, 0.0 }
  0xc5   : > { %v662_v5 = vmax.f32 %v471_v1, 0.0  ;;  %v661_v19 = vmax.f32 %v616_v10, 0.0 }
  0xc6   : > { %v663_v6 = vmax.f32 %v520_v4, 0.0 }
  0xc7   : > { %v718_v7 = vpack.c.bf16 %v662_v5, %v658_v0 }
  0xc8   : > { %v719_v9 = vpack.c.bf16 %v663_v6, %v659_v3 }
  0xc9   : > { %v568_v11 = vpop.f32.mrf.mxu2  ;;  %1019 = vmatmul.bf16.gmra.mxu0 %v718_v7 }
  0xca   : > { %v569_v12 = vadd.f32 %v568_v11, %v1986_v38  ;;  %v617_v13 = vpop.f32.mrf.mxu3  ;;  %1068 = vmatmul.bf16.gmra.mxu1 %v719_v9  ;;  %v473_v14 = vpop.f32.mrf.mxu0 }
  0xcb   : > { %v618_v15 = vadd.f32 %v617_v13, %v1989_v40  ;;  %v522_v16 = vpop.f32.mrf.mxu1  ;;  %v474_v22 = vadd.f32 %v473_v14, %v1979_v26 }
  0xcc   : > { %v664_v18 = vmax.f32 %v569_v12, 0.0  ;;  %v523_v24 = vadd.f32 %v522_v16, %v1981_v28 }
  0xcd   : > { %v665_v20 = vmax.f32 %v618_v15, 0.0  ;;  %v666_v30 = vmax.f32 %v474_v22, 0.0 }
  0xce   : > { %v720_v21 = vpack.c.bf16 %v664_v18, %v660_v17  ;;  %v667_v33 = vmax.f32 %v523_v24, 0.0 }
  0xcf   : > { %v721_v23 = vpack.c.bf16 %v665_v20, %v661_v19 }
  0xd0   : > { %1117 = vmatmul.bf16.gmra.mxu2 %v720_v21 }
  0xd1   : > { %1166 = vmatmul.bf16.gmra.mxu3 %v721_v23  ;;  %v571_v25 = vpop.f32.mrf.mxu2 }
  0xd2   : > { %v620_v27 = vpop.f32.mrf.mxu3  ;;  %v475_v29 = vpop.f32.mrf.mxu0  ;;  %v572_v39 = vadd.f32 %v571_v25, %v1986_v38 }
  0xd3   : > { %v476_v31 = vadd.f32 %v475_v29, %v1979_v26  ;;  %v524_v32 = vpop.f32.mrf.mxu1  ;;  %v621_v42 = vadd.f32 %v620_v27, %v1989_v40 }
  0xd4   : > { %v525_v34 = vadd.f32 %v524_v32, %v1981_v28  ;;  %v668_v49 = vmax.f32 %v572_v39, 0.0 }
  0xd5   : > { %v670_v35 = vmax.f32 %v476_v31, 0.0  ;;  %v669_v51 = vmax.f32 %v621_v42, 0.0 }
  0xd6   : > { %v671_v36 = vmax.f32 %v525_v34, 0.0 }
  0xd7   : > { %v722_v37 = vpack.c.bf16 %v670_v35, %v666_v30 }
  0xd8   : > { %v723_v41 = vpack.c.bf16 %v671_v36, %v667_v33 }
  0xd9   : > { %v573_v43 = vpop.f32.mrf.mxu2  ;;  %1024 = vmatmul.bf16.gmra.mxu0 %v722_v37 }
  0xda   : > { %v574_v44 = vadd.f32 %v573_v43, %v1986_v38  ;;  %v622_v45 = vpop.f32.mrf.mxu3  ;;  %1073 = vmatmul.bf16.gmra.mxu1 %v723_v41  ;;  %v478_v46 = vpop.f32.mrf.mxu0 }
  0xdb   : > { %v623_v47 = vadd.f32 %v622_v45, %v1989_v40  ;;  %v527_v48 = vpop.f32.mrf.mxu1  ;;  %v479_v54 = vadd.f32 %v478_v46, %v1979_v26 }
  0xdc   : > { %v672_v50 = vmax.f32 %v574_v44, 0.0  ;;  %v528_v56 = vadd.f32 %v527_v48, %v1981_v28 }
  0xdd   : > { %v673_v52 = vmax.f32 %v623_v47, 0.0  ;;  %v674_v60 = vmax.f32 %v479_v54, 0.0 }
  0xde   : > { %v724_v53 = vpack.c.bf16 %v672_v50, %v668_v49  ;;  %v675_v63 = vmax.f32 %v528_v56, 0.0 }
  0xdf   : > { %v725_v55 = vpack.c.bf16 %v673_v52, %v669_v51 }
  0xe0   : > { %1122 = vmatmul.bf16.gmra.mxu2 %v724_v53 }
  0xe1   : > { %1171 = vmatmul.bf16.gmra.mxu3 %v725_v55  ;;  %v576_v57 = vpop.f32.mrf.mxu2 }
  0xe2   : > { %v625_v58 = vpop.f32.mrf.mxu3  ;;  %v480_v59 = vpop.f32.mrf.mxu0  ;;  %v577_v4 = vadd.f32 %v576_v57, %v1986_v38 }
  0xe3   : > { %v481_v61 = vadd.f32 %v480_v59, %v1979_v26  ;;  %v529_v62 = vpop.f32.mrf.mxu1  ;;  %v626_v6 = vadd.f32 %v625_v58, %v1989_v40 }
  0xe4   : > { %v530_v0 = vadd.f32 %v529_v62, %v1981_v28  ;;  %v676_v13 = vmax.f32 %v577_v4, 0.0 }
  0xe5   : > { %v678_v1 = vmax.f32 %v481_v61, 0.0  ;;  %v677_v15 = vmax.f32 %v626_v6, 0.0 }
  0xe6   : > { %v679_v2 = vmax.f32 %v530_v0, 0.0 }
  0xe7   : > { %v726_v3 = vpack.c.bf16 %v678_v1, %v674_v60 }
  0xe8   : > { %v727_v5 = vpack.c.bf16 %v679_v2, %v675_v63 }
  0xe9   : > { %v578_v7 = vpop.f32.mrf.mxu2  ;;  %1029 = vmatmul.bf16.gmra.mxu0 %v726_v3 }
  0xea   : > { %v579_v8 = vadd.f32 %v578_v7, %v1986_v38  ;;  %v627_v9 = vpop.f32.mrf.mxu3  ;;  %1078 = vmatmul.bf16.gmra.mxu1 %v727_v5  ;;  %v483_v10 = vpop.f32.mrf.mxu0 }
  0xeb   : > { %v628_v11 = vadd.f32 %v627_v9, %v1989_v40  ;;  %v532_v12 = vpop.f32.mrf.mxu1  ;;  %v484_v18 = vadd.f32 %v483_v10, %v1979_v26 }
  0xec   : > { %v680_v14 = vmax.f32 %v579_v8, 0.0  ;;  %v533_v20 = vadd.f32 %v532_v12, %v1981_v28 }
  0xed   : > { %v681_v16 = vmax.f32 %v628_v11, 0.0  ;;  %v682_v24 = vmax.f32 %v484_v18, 0.0 }
  0xee   : > { %v728_v17 = vpack.c.bf16 %v680_v14, %v676_v13  ;;  %v683_v29 = vmax.f32 %v533_v20, 0.0 }
  0xef   : > { %v729_v19 = vpack.c.bf16 %v681_v16, %v677_v15 }
  0xf0   : > { %1127 = vmatmul.bf16.gmra.mxu2 %v728_v17 }
  0xf1   : > { %1176 = vmatmul.bf16.gmra.mxu3 %v729_v19  ;;  %v581_v21 = vpop.f32.mrf.mxu2 }
  0xf2   : > { %v630_v22 = vpop.f32.mrf.mxu3  ;;  %v485_v23 = vpop.f32.mrf.mxu0  ;;  %v582_v34 = vadd.f32 %v581_v21, %v1986_v38 }
  0xf3   : > { %v486_v25 = vadd.f32 %v485_v23, %v1979_v26  ;;  %v534_v27 = vpop.f32.mrf.mxu1  ;;  %v631_v36 = vadd.f32 %v630_v22, %v1989_v40 }
  0xf4   : > { %v535_v30 = vadd.f32 %v534_v27, %v1981_v28  ;;  %v684_v45 = vmax.f32 %v582_v34, 0.0 }
  0xf5   : > { %v686_v31 = vmax.f32 %v486_v25, 0.0  ;;  %v685_v47 = vmax.f32 %v631_v36, 0.0 }
  0xf6   : > { %v687_v32 = vmax.f32 %v535_v30, 0.0 }
  0xf7   : > { %v730_v33 = vpack.c.bf16 %v686_v31, %v682_v24 }
  0xf8   : > { %v731_v35 = vpack.c.bf16 %v687_v32, %v683_v29 }
  0xf9   : > { %v583_v37 = vpop.f32.mrf.mxu2  ;;  %1034 = vmatmul.bf16.gmra.mxu0 %v730_v33 }
  0xfa   : > { %v584_v39 = vadd.f32 %v583_v37, %v1986_v38  ;;  %v632_v41 = vpop.f32.mrf.mxu3  ;;  %1083 = vmatmul.bf16.gmra.mxu1 %v731_v35  ;;  %v488_v42 = vpop.f32.mrf.mxu0 }
  0xfb   : > { %v633_v43 = vadd.f32 %v632_v41, %v1989_v40  ;;  %v537_v44 = vpop.f32.mrf.mxu1  ;;  %v489_v51 = vadd.f32 %v488_v42, %v1979_v26 }
  0xfc   : > { %v688_v46 = vmax.f32 %v584_v39, 0.0  ;;  %v538_v52 = vadd.f32 %v537_v44, %v1981_v28 }
  0xfd   : > { %v689_v48 = vmax.f32 %v633_v43, 0.0  ;;  %v690_v56 = vmax.f32 %v489_v51, 0.0 }
  0xfe   : > { %v732_v49 = vpack.c.bf16 %v688_v46, %v684_v45  ;;  %v691_v59 = vmax.f32 %v538_v52, 0.0 }
  0xff   : > { %v733_v50 = vpack.c.bf16 %v689_v48, %v685_v47 }
 0x100   : > { %1132 = vmatmul.bf16.gmra.mxu2 %v732_v49 }
 0x101   : > { %1181 = vmatmul.bf16.gmra.mxu3 %v733_v50  ;;  %v586_v53 = vpop.f32.mrf.mxu2 }
 0x102   : > { %v635_v54 = vpop.f32.mrf.mxu3  ;;  %v490_v55 = vpop.f32.mrf.mxu0  ;;  %v587_v0 = vadd.f32 %v586_v53, %v1986_v38 }
 0x103   : > { %v491_v57 = vadd.f32 %v490_v55, %v1979_v26  ;;  %v539_v58 = vpop.f32.mrf.mxu1  ;;  %v636_v2 = vadd.f32 %v635_v54, %v1989_v40 }
 0x104   : > { %v540_v60 = vadd.f32 %v539_v58, %v1981_v28  ;;  %v692_v9 = vmax.f32 %v587_v0, 0.0 }
 0x105   : > { %v694_v61 = vmax.f32 %v491_v57, 0.0  ;;  %v693_v11 = vmax.f32 %v636_v2, 0.0 }
 0x106   : > { %v695_v62 = vmax.f32 %v540_v60, 0.0 }
 0x107   : > { %v734_v63 = vpack.c.bf16 %v694_v61, %v690_v56 }
 0x108   : > { %v735_v1 = vpack.c.bf16 %v695_v62, %v691_v59 }
 0x109   : > { %v588_v3 = vpop.f32.mrf.mxu2  ;;  %1039 = vmatmul.bf16.gmra.mxu0 %v734_v63 }
 0x10a   : > { %v589_v4 = vadd.f32 %v588_v3, %v1986_v38  ;;  %v637_v5 = vpop.f32.mrf.mxu3  ;;  %1088 = vmatmul.bf16.gmra.mxu1 %v735_v1  ;;  %v493_v6 = vpop.f32.mrf.mxu0 }
 0x10b   : > { %v638_v7 = vadd.f32 %v637_v5, %v1989_v40  ;;  %v542_v8 = vpop.f32.mrf.mxu1  ;;  %v494_v15 = vadd.f32 %v493_v6, %v1979_v26 }
 0x10c   : > { %v696_v10 = vmax.f32 %v589_v4, 0.0  ;;  %v543_v16 = vadd.f32 %v542_v8, %v1981_v28 }
 0x10d   : > { %v697_v12 = vmax.f32 %v638_v7, 0.0  ;;  %v698_v20 = vmax.f32 %v494_v15, 0.0 }
 0x10e   : > { %v736_v13 = vpack.c.bf16 %v696_v10, %v692_v9  ;;  %v699_v23 = vmax.f32 %v543_v16, 0.0  ;;  %v2054_v9 = vld [vmem:[%s2102_s4] ss:$0 sm:$0xff] }
 0x10f   : > { %v737_v14 = vpack.c.bf16 %v697_v12, %v693_v11 }
 0x110   : > { %1137 = vmatmul.bf16.gmra.mxu2 %v736_v13 }
 0x111   : > { %1186 = vmatmul.bf16.gmra.mxu3 %v737_v14  ;;  %v591_v17 = vpop.f32.mrf.mxu2 }
 0x112   : > { %v640_v18 = vpop.f32.mrf.mxu3  ;;  %v495_v19 = vpop.f32.mrf.mxu0  ;;  %v592_v30 = vadd.f32 %v591_v17, %v1986_v38 }
 0x113   : > { %v496_v21 = vadd.f32 %v495_v19, %v1979_v26  ;;  %v544_v22 = vpop.f32.mrf.mxu1  ;;  %v641_v32 = vadd.f32 %v640_v18, %v1989_v40 }
 0x114   : > { %v545_v24 = vadd.f32 %v544_v22, %v1981_v28  ;;  %v700_v41 = vmax.f32 %v592_v30, 0.0 }
 0x115   : > { %v702_v25 = vmax.f32 %v496_v21, 0.0  ;;  %v701_v43 = vmax.f32 %v641_v32, 0.0 }
 0x116   : > { %v703_v27 = vmax.f32 %v545_v24, 0.0 }
 0x117   : > { %v738_v29 = vpack.c.bf16 %v702_v25, %v698_v20 }
 0x118   : > { %v739_v31 = vpack.c.bf16 %v703_v27, %v699_v23 }
 0x119   : > { %v593_v33 = vpop.f32.mrf.mxu2  ;;  %1044 = vmatmul.bf16.gmra.mxu0 %v738_v29 }
 0x11a   : > { %v594_v34 = vadd.f32 %v593_v33, %v1986_v38  ;;  %v642_v35 = vpop.f32.mrf.mxu3  ;;  %1093 = vmatmul.bf16.gmra.mxu1 %v739_v31  ;;  %v498_v36 = vpop.f32.mrf.mxu0 }
 0x11b   : > { %v643_v37 = vadd.f32 %v642_v35, %v1989_v40  ;;  %v547_v39 = vpop.f32.mrf.mxu1  ;;  %v499_v47 = vadd.f32 %v498_v36, %v1979_v26 }
 0x11c   : > { %v704_v42 = vmax.f32 %v594_v34, 0.0  ;;  %v548_v48 = vadd.f32 %v547_v39, %v1981_v28 }
 0x11d   : > { %v705_v44 = vmax.f32 %v643_v37, 0.0  ;;  %v706_v52 = vmax.f32 %v499_v47, 0.0 }
 0x11e   : > { %v740_v45 = vpack.c.bf16 %v704_v42, %v700_v41  ;;  %v707_v55 = vmax.f32 %v548_v48, 0.0 }
 0x11f   : > { %v741_v46 = vpack.c.bf16 %v705_v44, %v701_v43 }
 0x120   : > { %1142 = vmatmul.bf16.gmra.mxu2 %v740_v45 }
 0x121   : > { %1191 = vmatmul.bf16.gmra.mxu3 %v741_v46  ;;  %v596_v49 = vpop.f32.mrf.mxu2 }
 0x122   : > { %v645_v50 = vpop.f32.mrf.mxu3  ;;  %v500_v51 = vpop.f32.mrf.mxu0  ;;  %v597_v60 = vadd.f32 %v596_v49, %v1986_v38 }
 0x123   : > { %v501_v53 = vadd.f32 %v500_v51, %v1979_v26  ;;  %v549_v54 = vpop.f32.mrf.mxu1  ;;  %v646_v62 = vadd.f32 %v645_v50, %v1989_v40 }
 0x124   : > { %v550_v56 = vadd.f32 %v549_v54, %v1981_v28  ;;  %v708_v2 = vmax.f32 %v597_v60, 0.0 }
 0x125   : > { %v710_v57 = vmax.f32 %v501_v53, 0.0  ;;  %v709_v4 = vmax.f32 %v646_v62, 0.0 }
 0x126   : > { %v711_v58 = vmax.f32 %v550_v56, 0.0 }
 0x127   : > { %v742_v59 = vpack.c.bf16 %v710_v57, %v706_v52 }
 0x128   : > { %v743_v61 = vpack.c.bf16 %v711_v58, %v707_v55 }
 0x129   : > { %v598_v63 = vpop.f32.mrf.mxu2  ;;  %1049 = vmatmul.bf16.gmra.mxu0 %v742_v59 }
 0x12a   : > { %v599_v0 = vadd.f32 %v598_v63, %v1986_v38  ;;  %v647_v1 = vpop.f32.mrf.mxu3  ;;  %1098 = vmatmul.bf16.gmra.mxu1 %v743_v61 }
 0x12b   : > { %v648_v26 = vadd.f32 %v647_v1, %v1989_v40 }
 0x12c   : > { %v712_v3 = vmax.f32 %v599_v0, 0.0 }
 0x12d   : > { %v713_v28 = vmax.f32 %v648_v26, 0.0 }
 0x12e   : > { %v744_v5 = vpack.c.bf16 %v712_v3, %v708_v2 }
 0x12f   : > { %v745_v6 = vpack.c.bf16 %v713_v28, %v709_v4 }
 0x130   : > { %1147 = vmatmul.bf16.gmra.mxu2 %v744_v5 }
 0x131   : > { %1196 = vmatmul.bf16.gmra.mxu3 %v745_v6 }
 0x136   : > { %v1015_v7 = vpop.f32.mrf.mxu0 }
 0x137   : > { %v1064_v8 = vpop.f32.mrf.mxu1  ;;  %v1016_v38 = vadd.f32 %v2054_v9, %v1015_v7 }
 0x139   : > { %v1065_v11 = vadd.f32 %v1064_v8, %v1016_v38 }
 0x13e   : > { %v1017_v10 = vpop.f32.mrf.mxu0 }
 0x13f   : > { %v1066_v40 = vpop.f32.mrf.mxu1  ;;  %v1018_v15 = vadd.f32 %v2054_v9, %v1017_v10 }
 0x141   : > { %v1067_v19 = vadd.f32 %v1066_v40, %v1018_v15 }
 0x143   : > { %v1113_v12 = vpop.f32.mrf.mxu2 }
 0x144   : > { %v1114_v13 = vadd.f32 %v1113_v12, %v1065_v11  ;;  %v1162_v14 = vpop.f32.mrf.mxu3 }
 0x146   : > { %v1163_v16 = vadd.f32 %v1162_v14, %v1114_v13  ;;  %v1020_v17 = vpop.f32.mrf.mxu0 }
 0x147   : > { %v1069_v18 = vpop.f32.mrf.mxu1  ;;  %v1021_v23 = vadd.f32 %v2054_v9, %v1020_v17 }
 0x148   : > { %1202 = vst [vmem:[%s2062_s21] sm:$0xff] %v1163_v16 }
 0x149   : > { %v1070_v29 = vadd.f32 %v1069_v18, %v1021_v23 }
 0x14b   : > { %v1115_v20 = vpop.f32.mrf.mxu2 }
 0x14c   : > { %v1116_v21 = vadd.f32 %v1115_v20, %v1067_v19  ;;  %v1164_v22 = vpop.f32.mrf.mxu3 }
 0x14e   : > { %v1165_v24 = vadd.f32 %v1164_v22, %v1116_v21  ;;  %v1022_v25 = vpop.f32.mrf.mxu0 }
 0x14f   : > { %v1071_v27 = vpop.f32.mrf.mxu1  ;;  %v1023_v33 = vadd.f32 %v2054_v9, %v1022_v25 }
 0x150   : > { %1203 = vst [vmem:[%s2062_s21 + $0x8] sm:$0xff] %v1165_v24 }
 0x151   : > { %v1072_v37 = vadd.f32 %v1071_v27, %v1023_v33 }
 0x153   : > { %v1118_v30 = vpop.f32.mrf.mxu2 }
 0x154   : > { %v1119_v31 = vadd.f32 %v1118_v30, %v1070_v29  ;;  %v1167_v32 = vpop.f32.mrf.mxu3 }
 0x156   : > { %v1168_v34 = vadd.f32 %v1167_v32, %v1119_v31  ;;  %v1025_v35 = vpop.f32.mrf.mxu0 }
 0x157   : > { %v1074_v36 = vpop.f32.mrf.mxu1  ;;  %v1026_v43 = vadd.f32 %v2054_v9, %v1025_v35 }
 0x158   : > { %1204 = vst [vmem:[%s2062_s21 + $0x10] sm:$0xff] %v1168_v34 }
 0x159   : > { %v1075_v47 = vadd.f32 %v1074_v36, %v1026_v43 }
 0x15b   : > { %v1120_v39 = vpop.f32.mrf.mxu2 }
 0x15c   : > { %v1121_v41 = vadd.f32 %v1120_v39, %v1072_v37  ;;  %v1169_v42 = vpop.f32.mrf.mxu3 }
 0x15e   : > { %v1170_v44 = vadd.f32 %v1169_v42, %v1121_v41  ;;  %v1027_v45 = vpop.f32.mrf.mxu0 }
 0x15f   : > { %v1076_v46 = vpop.f32.mrf.mxu1  ;;  %v1028_v51 = vadd.f32 %v2054_v9, %v1027_v45 }
 0x160   : > { %1205 = vst [vmem:[%s2062_s21 + $0x18] sm:$0xff] %v1170_v44 }
 0x161   : > { %v1077_v55 = vadd.f32 %v1076_v46, %v1028_v51 }
 0x163   : > { %v1123_v48 = vpop.f32.mrf.mxu2 }
 0x164   : > { %v1124_v49 = vadd.f32 %v1123_v48, %v1075_v47  ;;  %v1172_v50 = vpop.f32.mrf.mxu3 }
 0x166   : > { %v1173_v52 = vadd.f32 %v1172_v50, %v1124_v49  ;;  %v1030_v53 = vpop.f32.mrf.mxu0 }
 0x167   : > { %v1079_v54 = vpop.f32.mrf.mxu1  ;;  %v1031_v59 = vadd.f32 %v2054_v9, %v1030_v53 }
 0x168   : > { %1206 = vst [vmem:[%s2062_s21 + $0x20] sm:$0xff] %v1173_v52 }
 0x169   : > { %v1080_v63 = vadd.f32 %v1079_v54, %v1031_v59 }
 0x16b   : > { %v1125_v56 = vpop.f32.mrf.mxu2 }
 0x16c   : > { %v1126_v57 = vadd.f32 %v1125_v56, %v1077_v55  ;;  %v1174_v58 = vpop.f32.mrf.mxu3 }
 0x16e   : > { %v1175_v60 = vadd.f32 %v1174_v58, %v1126_v57  ;;  %v1032_v61 = vpop.f32.mrf.mxu0 }
 0x16f   : > { %v1081_v62 = vpop.f32.mrf.mxu1  ;;  %v1033_v2 = vadd.f32 %v2054_v9, %v1032_v61 }
 0x170   : > { %1207 = vst [vmem:[%s2062_s21 + $0x28] sm:$0xff] %v1175_v60 }
 0x171   : > { %v1082_v5 = vadd.f32 %v1081_v62, %v1033_v2 }
 0x173   : > { %v1128_v0 = vpop.f32.mrf.mxu2 }
 0x174   : > { %v1129_v1 = vadd.f32 %v1128_v0, %v1080_v63  ;;  %v1177_v26 = vpop.f32.mrf.mxu3 }
 0x176   : > { %v1178_v3 = vadd.f32 %v1177_v26, %v1129_v1  ;;  %v1035_v4 = vpop.f32.mrf.mxu0 }
 0x177   : > { %v1084_v28 = vpop.f32.mrf.mxu1  ;;  %v1036_v38 = vadd.f32 %v2054_v9, %v1035_v4 }
 0x178   : > { %1208 = vst [vmem:[%s2062_s21 + $0x30] sm:$0xff] %v1178_v3 }
 0x179   : > { %v1085_v12 = vadd.f32 %v1084_v28, %v1036_v38 }
 0x17b   : > { %v1130_v6 = vpop.f32.mrf.mxu2 }
 0x17c   : > { %v1131_v7 = vadd.f32 %v1130_v6, %v1082_v5  ;;  %v1179_v8 = vpop.f32.mrf.mxu3 }
 0x17e   : > { %v1180_v10 = vadd.f32 %v1179_v8, %v1131_v7  ;;  %v1037_v40 = vpop.f32.mrf.mxu0 }
 0x17f   : > { %v1086_v11 = vpop.f32.mrf.mxu1  ;;  %v1038_v16 = vadd.f32 %v2054_v9, %v1037_v40 }
 0x180   : > { %1209 = vst [vmem:[%s2062_s21 + $0x38] sm:$0xff] %v1180_v10 }
 0x181   : > { %v1087_v20 = vadd.f32 %v1086_v11, %v1038_v16 }
 0x183   : > { %v1133_v13 = vpop.f32.mrf.mxu2 }
 0x184   : > { %v1134_v14 = vadd.f32 %v1133_v13, %v1085_v12  ;;  %v1182_v15 = vpop.f32.mrf.mxu3 }
 0x186   : > { %v1183_v17 = vadd.f32 %v1182_v15, %v1134_v14  ;;  %v1040_v18 = vpop.f32.mrf.mxu0 }
 0x187   : > { %v1089_v19 = vpop.f32.mrf.mxu1  ;;  %v1041_v24 = vadd.f32 %v2054_v9, %v1040_v18 }
 0x188   : > { %1210 = vst [vmem:[%s2062_s21 + $0x40] sm:$0xff] %v1183_v17 }
 0x189   : > { %v1090_v30 = vadd.f32 %v1089_v19, %v1041_v24 }
 0x18b   : > { %v1135_v21 = vpop.f32.mrf.mxu2 }
 0x18c   : > { %v1136_v22 = vadd.f32 %v1135_v21, %v1087_v20  ;;  %v1184_v23 = vpop.f32.mrf.mxu3 }
 0x18e   : > { %v1185_v25 = vadd.f32 %v1184_v23, %v1136_v22  ;;  %v1042_v27 = vpop.f32.mrf.mxu0 }
 0x18f   : > { %v1091_v29 = vpop.f32.mrf.mxu1  ;;  %v1043_v34 = vadd.f32 %v2054_v9, %v1042_v27 }
 0x190   : > { %1211 = vst [vmem:[%s2062_s21 + $0x48] sm:$0xff] %v1185_v25 }
 0x191   : > { %v1092_v37 = vadd.f32 %v1091_v29, %v1043_v34 }
 0x193   : > { %v1138_v31 = vpop.f32.mrf.mxu2 }
 0x194   : > { %v1139_v32 = vadd.f32 %v1138_v31, %v1090_v30  ;;  %v1187_v33 = vpop.f32.mrf.mxu3 }
 0x196   : > { %v1188_v35 = vadd.f32 %v1187_v33, %v1139_v32  ;;  %v1045_v36 = vpop.f32.mrf.mxu0 }
 0x197   : > { %v1094_v39 = vpop.f32.mrf.mxu1  ;;  %v1046_v44 = vadd.f32 %v2054_v9, %v1045_v36 }
 0x198   : > { %1212 = vst [vmem:[%s2062_s21 + $0x50] sm:$0xff] %v1188_v35 }
 0x199   : > { %v1095_v47 = vadd.f32 %v1094_v39, %v1046_v44 }
 0x19b   : > { %v1140_v41 = vpop.f32.mrf.mxu2 }
 0x19c   : > { %v1141_v42 = vadd.f32 %v1140_v41, %v1092_v37  ;;  %v1189_v43 = vpop.f32.mrf.mxu3 }
 0x19e   : > { %v1190_v45 = vadd.f32 %v1189_v43, %v1141_v42  ;;  %v1047_v46 = vpop.f32.mrf.mxu0 }
 0x19f   : > { %v1096_v51 = vpop.f32.mrf.mxu1  ;;  %v1048_v52 = vadd.f32 %v2054_v9, %v1047_v46 }
 0x1a0   : > { %1213 = vst [vmem:[%s2062_s21 + $0x58] sm:$0xff] %v1190_v45 }
 0x1a1   : > { %v1097_v55 = vadd.f32 %v1096_v51, %v1048_v52 }
 0x1a3   : > { %v1143_v48 = vpop.f32.mrf.mxu2 }
 0x1a4   : > { %v1144_v49 = vadd.f32 %v1143_v48, %v1095_v47  ;;  %v1192_v50 = vpop.f32.mrf.mxu3 }
 0x1a6   : > { %v1193_v53 = vadd.f32 %v1192_v50, %v1144_v49  ;;  %v1050_v54 = vpop.f32.mrf.mxu0 }
 0x1a7   : > { %v1051_v59 = vadd.f32 %v2054_v9, %v1050_v54  ;;  %v1099_v61 = vpop.f32.mrf.mxu1 }
 0x1a8   : > { %1214 = vst [vmem:[%s2062_s21 + $0x60] sm:$0xff] %v1193_v53 }
 0x1a9   : > { %v1100_v62 = vadd.f32 %v1099_v61, %v1051_v59 }
 0x1ab   : > { %v1145_v56 = vpop.f32.mrf.mxu2 }
 0x1ac   : > { %v1146_v57 = vadd.f32 %v1145_v56, %v1097_v55  ;;  %v1194_v58 = vpop.f32.mrf.mxu3 }
 0x1ae   : > { %v1195_v60 = vadd.f32 %v1194_v58, %v1146_v57  ;;  %v1052_v63 = vpop.f32.mrf.mxu0 }
 0x1af   : > { %v1053_v2 = vadd.f32 %v2054_v9, %v1052_v63  ;;  %v1101_v4 = vpop.f32.mrf.mxu1 }
 0x1b0   : > { %1215 = vst [vmem:[%s2062_s21 + $0x68] sm:$0xff] %v1195_v60 }
 0x1b1   : > { %v1102_v28 = vadd.f32 %v1101_v4, %v1053_v2 }
 0x1b3   : > { %v1148_v0 = vpop.f32.mrf.mxu2 }
 0x1b4   : > { %v1149_v1 = vadd.f32 %v1148_v0, %v1100_v62  ;;  %v1197_v26 = vpop.f32.mrf.mxu3 }
 0x1b6   : > { %v1198_v3 = vadd.f32 %v1197_v26, %v1149_v1 }
 0x1b8   : > { %1216 = vst [vmem:[%s2062_s21 + $0x70] sm:$0xff] %v1198_v3 }
 0x1bb   : > { %v1150_v5 = vpop.f32.mrf.mxu2 }
 0x1bc   : > { %v1151_v6 = vadd.f32 %v1150_v5, %v1102_v28  ;;  %v1199_v7 = vpop.f32.mrf.mxu3 }
 0x1be   : > { %v1200_v8 = vadd.f32 %v1199_v7, %v1151_v6 }
 0x1c0   : > { %1217 = vst [vmem:[%s2062_s21 + $0x78] sm:$0xff] %v1200_v8 }
 0x1c1 PF: > { %s15_s18 = sadd.s32 1, %s1620_s18  }
 0x1c2   : > { %p12_p4 = scmp.ge.s32.totalorder %s15_s18, 4  }
 0x1c4   :  { %14 = sbr.rel (!%p12_p4) target bundleno = 1 (0x1), region = 70 }

</bundles_post_ra>
